<compile_context>
chip_gen: v7x
topology: tpu7x:2x2x1
jax: 0.10.0
libtpu: 0.0.40
codegen_flags: <defaults>
</compile_context>

<pallas_src>
import functools
import math

import jax
import jax.numpy as jnp
from jax import lax
from jax.experimental import pallas as pl
from jax.experimental.pallas import tpu as pltpu

_EPS = 1e-6  # LayerNorm eps (matches reference module)


def _vmem_limit_bytes():
    try:
        cap = pltpu.get_tpu_info().vmem_capacity_bytes
    except Exception:
        return 48 * 1024 * 1024           # safe default (v7x has 64 MiB/TC)
    return min(int(cap * 3 // 4), 100 * 1024 * 1024)


_VMEM_LIMIT = _vmem_limit_bytes()
_BIG_VMEM = _VMEM_LIMIT >= 80 * 1024 * 1024   # v5e / v6e (128 MiB physical)
_TM_MAX = 2048 if _BIG_VMEM else 1024
_TN = 512 if _BIG_VMEM else 256
_TK = 1024 if _BIG_VMEM else 512


def _pick(dim, pref, align):
    """Largest `align`-multiple divisor of `dim` that is <= pref (or `dim`)."""
    if dim <= pref:
        return dim
    t = (pref // align) * align
    while t >= align:
        if dim % t == 0:
            return t
        t -= align
    return dim


def _mosaic(sem):
    return pltpu.CompilerParams(dimension_semantics=sem,
                                vmem_limit_bytes=_VMEM_LIMIT)


# ----------------------------------------------------------------------------
# (optional LayerNorm) + GEMM + bias (+ optional SiLU), tiled over (M, N).
# M = B*L (batch folded into M); K untiled (LayerNorm needs whole rows).
# The normalized/bf16-cast x tile is cached in VMEM scratch and reused over
# the whole N sweep (N axis is the fastest grid axis and marked "arbitrary").
# ----------------------------------------------------------------------------

def _linear2d_kernel(ln, act, *refs):
    if ln:
        x_ref, g_ref, bt_ref, w_ref, b_ref, o_ref, x_sc = refs
    else:
        x_ref, w_ref, b_ref, o_ref, x_sc = refs

    @pl.when(pl.program_id(1) == 0)
    def _():
        xv = x_ref[...].astype(jnp.float32)
        if ln:
            mu = jnp.mean(xv, axis=-1, keepdims=True)
            var = jnp.mean((xv - mu) ** 2, axis=-1, keepdims=True)
            xv = (xv - mu) * lax.rsqrt(var + _EPS) * g_ref[...] + bt_ref[...]
        x_sc[...] = xv.astype(jnp.bfloat16)

    y = jnp.dot(x_sc[...], w_ref[...],
                preferred_element_type=jnp.float32) + b_ref[...]
    if act == "silu":
        y = y * jax.nn.sigmoid(y)
    o_ref[...] = y.astype(o_ref.dtype)


def linear2d(x, w, b, *, gamma=None, beta=None, act=None,
             out_dtype=jnp.float32):
    M, K = x.shape
    N = w.shape[1]
    tm = _pick(M, _TM_MAX, 8)      # M//tm == 1 whenever it fits
    tn = _pick(N, _TN, 128)
    ln = gamma is not None
    kern = functools.partial(_linear2d_kernel, ln, act)

    in_specs = [pl.BlockSpec((tm, K), lambda i, j: (i, 0))]
    args = [x]
    if ln:
        in_specs += [pl.BlockSpec((1, K), lambda i, j: (0, 0)),
                     pl.BlockSpec((1, K), lambda i, j: (0, 0))]
        args += [gamma, beta]
    in_specs += [pl.BlockSpec((K, tn), lambda i, j: (0, j)),
                 pl.BlockSpec((1, tn), lambda i, j: (0, j))]
    args += [w, b]

    return pl.pallas_call(
        kern,
        out_shape=jax.ShapeDtypeStruct((M, N), out_dtype),
        grid=(M // tm, N // tn),
        in_specs=in_specs,
        out_specs=pl.BlockSpec((tm, tn), lambda i, j: (i, j)),
        scratch_shapes=[pltpu.VMEM((tm, K), jnp.bfloat16)],
        compiler_params=_mosaic(("parallel", "arbitrary")),
    )(*args)


# ----------------------------------------------------------------------------
# GEMM with fused epilogue `out = res + (h @ W + b) * mod`, tiled over
# (B, N, K).  The output block index is constant across K, so it stays
# VMEM-resident and is used directly as the f32 accumulator (no scratch).
# ----------------------------------------------------------------------------

def _res_linear_kernel(x_ref, w_ref, b_ref, res_ref, mod_ref, o_ref):
    k = pl.program_id(2)

    @pl.when(k == 0)
    def _():
        o_ref[...] = jnp.zeros_like(o_ref)

    o_ref[0] += jnp.dot(x_ref[0], w_ref[...],
                        preferred_element_type=jnp.float32)

    @pl.when(k == pl.num_programs(2) - 1)
    def _():
        o_ref[0] = res_ref[0] + (o_ref[0] + b_ref[...]) * mod_ref[0]


def res_linear(x, w, b, res, mod):
    """x: (B,L,K) bf16, w: (K,N) bf16, b: (1,N) f32, res: (B,L,N) f32,
    mod: (B,1,N) f32 -> (B,L,N) f32."""
    B, L, K = x.shape
    N = w.shape[1]
    tn = _pick(N, _TN, 128)
    tk = _pick(K, _TK, 128)
    return pl.pallas_call(
        _res_linear_kernel,
        out_shape=jax.ShapeDtypeStruct((B, L, N), jnp.float32),
        grid=(B, N // tn, K // tk),
        in_specs=[
            pl.BlockSpec((1, L, tk), lambda bi, j, k: (bi, 0, k)),
            pl.BlockSpec((tk, tn), lambda bi, j, k: (k, j)),
            pl.BlockSpec((1, tn), lambda bi, j, k: (0, j)),
            pl.BlockSpec((1, L, tn), lambda bi, j, k: (bi, 0, j)),
            pl.BlockSpec((1, 1, tn), lambda bi, j, k: (bi, 0, j)),
        ],
        out_specs=pl.BlockSpec((1, L, tn), lambda bi, j, k: (bi, 0, j)),
        compiler_params=_mosaic(("parallel", "parallel", "arbitrary")),
    )(x, w, b, res, mod)


# ----------------------------------------------------------------------------
# adaLN modulation: Linear(SiLU(c)), tiled over N.  SiLU(c) is computed once
# into scratch (pl.when(j == 0)) and reused over the N sweep.
# ----------------------------------------------------------------------------

def _ada_kernel(c_ref, w_ref, b_ref, o_ref, cs_ref):
    @pl.when(pl.program_id(0) == 0)
    def _():
        c = c_ref[...].astype(jnp.float32)
        cs_ref[...] = (c * jax.nn.sigmoid(c)).astype(jnp.bfloat16)

    o_ref[...] = jnp.dot(cs_ref[...], w_ref[...],
                         preferred_element_type=jnp.float32) + b_ref[...]


def ada_mod(c, w, b):
    B, H = c.shape
    N = w.shape[1]
    tn = _pick(N, _TN, 128)
    return pl.pallas_call(
        _ada_kernel,
        out_shape=jax.ShapeDtypeStruct((B, N), jnp.float32),
        grid=(N // tn,),
        in_specs=[pl.BlockSpec((B, H), lambda j: (0, 0)),
                  pl.BlockSpec((H, tn), lambda j: (0, j)),
                  pl.BlockSpec((1, tn), lambda j: (0, j))],
        out_specs=pl.BlockSpec((B, tn), lambda j: (0, j)),
        scratch_shapes=[pltpu.VMEM((B, H), jnp.bfloat16)],
        compiler_params=_mosaic(("arbitrary",)),
    )(c, w, b)


# ----------------------------------------------------------------------------
# Multi-head attention, grid (B, heads, q-tiles).  q/k/v are sliced directly
# out of the (B, L, 3H) qkv buffer via the last-axis block index; the output
# (1, tq, hd) block lands directly in the (B, L, H) layout (no transposes).
# Additive bias mask[i] + mask[j] is rebuilt in-kernel from two O(L) vectors.
# ----------------------------------------------------------------------------

def _attn_kernel(scale, q_ref, k_ref, v_ref, mrow_ref, mcol_ref, o_ref):
    q = (q_ref[0].astype(jnp.float32) * scale).astype(jnp.bfloat16)  # (tq, hd)
    k = k_ref[0]                                                     # (L, hd)
    v = v_ref[0]                                                     # (L, hd)

    s = lax.dot_general(q, k, (((1,), (1,)), ((), ())),
                        preferred_element_type=jnp.float32)          # (tq, L)
    s = s + (mcol_ref[0] + mrow_ref[0])                              # bias
    m = jnp.max(s, axis=-1, keepdims=True)
    p = jnp.exp((s - m).astype(jnp.bfloat16))                        # bf16 EUP
    denom = jnp.sum(p.astype(jnp.float32), axis=-1, keepdims=True)
    o = jnp.dot(p, v, preferred_element_type=jnp.float32)            # (tq, hd)
    o_ref[0] = (o * pl.reciprocal(denom, approx=True)).astype(o_ref.dtype)


def attention(qkv, mrow, mcol, heads, scale, out_dtype=jnp.bfloat16):
    B, L, threeH = qkv.shape
    H = threeH // 3
    hd = H // heads
    assert H % heads == 0 and hd % 128 == 0, (
        "head-sliced attention BlockSpecs require hd to be a multiple of 128")
    tq = _pick(L, 256, 8)
    kern = functools.partial(_attn_kernel, scale)
    return pl.pallas_call(
        kern,
        out_shape=jax.ShapeDtypeStruct((B, L, H), out_dtype),
        grid=(B, heads, L // tq),
        in_specs=[
            pl.BlockSpec((1, tq, hd), lambda b, h, i: (b, i, h)),
            pl.BlockSpec((1, L, hd), lambda b, h, i: (b, 0, heads + h)),
            pl.BlockSpec((1, L, hd), lambda b, h, i: (b, 0, 2 * heads + h)),
            pl.BlockSpec((1, 1, L), lambda b, h, i: (b, 0, 0)),
            pl.BlockSpec((1, tq, 1), lambda b, h, i: (b, i, 0)),
        ],
        out_specs=pl.BlockSpec((1, tq, hd), lambda b, h, i: (b, i, h)),
        compiler_params=_mosaic(("parallel", "parallel", "parallel")),
    )(qkv, qkv, qkv, mrow, mcol)


# ----------------------------------------------------------------------------
# sequence mean (c = x.sum(dim=1) / L — unmasked, matching the reference)
# ----------------------------------------------------------------------------

def _mean_kernel(x_ref, o_ref):
    L = x_ref.shape[1]
    o_ref[0] = jnp.sum(x_ref[0].astype(jnp.float32), axis=0,
                       keepdims=True) * (1.0 / float(L))


def mean_seq(x):
    B, L, D = x.shape
    out = pl.pallas_call(
        _mean_kernel,
        out_shape=jax.ShapeDtypeStruct((B, 1, D), jnp.float32),
        grid=(B,),
        in_specs=[pl.BlockSpec((1, L, D), lambda b: (b, 0, 0))],
        out_specs=pl.BlockSpec((1, 1, D), lambda b: (b, 0, 0)),
        compiler_params=_mosaic(("parallel",)),
    )(x)
    return out.reshape(B, D)


# ----------------------------------------------------------------------------
# parameter init (deterministic, synthetic) + full TokenRefiner forward
# ----------------------------------------------------------------------------

def init_params(key, text_dim, hidden, num_blocks):
    keys = iter(jax.random.split(key, 16 + 32 * num_blocks))

    def lin(din, dout):
        # weights stored bf16 (MXU operand dtype); biases / LN params stay f32
        w = (jax.random.normal(next(keys), (din, dout), jnp.float32)
             / jnp.sqrt(float(din))).astype(jnp.bfloat16)
        b = jax.random.normal(next(keys), (1, dout), jnp.float32) * 0.01
        return w, b

    params = {}
    params["input_w"], params["input_b"] = lin(text_dim, hidden)   # input_embedder
    params["t_w1"], params["t_b1"] = lin(256, hidden)              # t_embedder
    params["t_w2"], params["t_b2"] = lin(hidden, hidden)
    params["c_w1"], params["c_b1"] = lin(text_dim, hidden)         # c_embedder
    params["c_w2"], params["c_b2"] = lin(hidden, hidden)

    blocks = []
    for _ in range(num_blocks):
        w_ada, b_ada = lin(hidden, 2 * hidden)
        g1 = jnp.ones((1, hidden), jnp.float32)
        bt1 = jnp.zeros((1, hidden), jnp.float32)
        w_qkv, b_qkv = lin(hidden, 3 * hidden)
        w_proj, b_proj = lin(hidden, hidden)
        g2 = jnp.ones((1, hidden), jnp.float32)
        bt2 = jnp.zeros((1, hidden), jnp.float32)
        w_m1, b_m1 = lin(hidden, 4 * hidden)
        w_m2, b_m2 = lin(4 * hidden, hidden)
        blocks.append((w_ada, b_ada, g1, bt1, w_qkv, b_qkv, w_proj, b_proj,
                       g2, bt2, w_m1, b_m1, w_m2, b_m2))
    params["blocks"] = blocks
    return params


def timestep_embedding(t, dim, max_period=10000.0, time_factor=1.0):
    t = t.astype(jnp.float32) * time_factor
    half = dim // 2
    freqs = jnp.exp(-math.log(max_period)
                    * jnp.arange(half, dtype=jnp.float32) / half)
    args = t[:, None] * freqs[None, :]
    return jnp.concatenate([jnp.cos(args), jnp.sin(args)], axis=-1)


def token_refiner(x, timesteps, mask, params, heads):
    B, L, Td = x.shape
    H = params["input_w"].shape[1]
    hd = H // heads
    scale = 1.0 / math.sqrt(hd)

    # --- prologue: t_embedder / c_embedder (tiny GEMMs) ---
    t_in = timestep_embedding(timesteps, 256)
    t1 = linear2d(t_in, params["t_w1"], params["t_b1"], act="silu")
    t = linear2d(t1, params["t_w2"], params["t_b2"])
    cmean = mean_seq(x)
    c1 = linear2d(cmean, params["c_w1"], params["c_b1"], act="silu")
    c = t + linear2d(c1, params["c_w2"], params["c_b2"])

    # --- input embedder: batch folded into M ---
    h = linear2d(x.reshape(B * L, Td), params["input_w"],
                 params["input_b"]).reshape(B, L, H)

    # additive attention bias m[b,i,j] = mask[b,i] + mask[b,j], built in-kernel
    if mask is None:
        mask = jnp.zeros((B, L), jnp.float32)
    mrow = mask.astype(jnp.float32).reshape(B, 1, L)
    mcol = mask.astype(jnp.float32).reshape(B, L, 1)

    for blk in params["blocks"]:
        (w_ada, b_ada, g1, bt1, w_qkv, b_qkv, w_proj, b_proj,
         g2, bt2, w_m1, b_m1, w_m2, b_m2) = blk

        mod = ada_mod(c, w_ada, b_ada)                 # (B, 2H) f32
        mod1 = mod[:, :H].reshape(B, 1, H)
        mod2 = mod[:, H:].reshape(B, 1, H)

        # norm1 + qkv projection (LN fused into the GEMM prologue), bf16 out
        qkv = linear2d(h.reshape(B * L, H), w_qkv, b_qkv,
                       gamma=g1, beta=bt1,
                       out_dtype=jnp.bfloat16).reshape(B, L, 3 * H)

        # heads sliced directly out of qkv; output lands in (B, L, H) layout
        attn = attention(qkv, mrow, mcol, heads, scale,
                         out_dtype=jnp.bfloat16)       # (B, L, H) bf16

        # x = x + proj(attn) * mod1   (fused epilogue, f32 residual stream)
        h = res_linear(attn, w_proj, b_proj, h, mod1)

        # x = x + fc2(SiLU(fc1(norm2(x)))) * mod2
        h1 = linear2d(h.reshape(B * L, H), w_m1, b_m1,
                      gamma=g2, beta=bt2, act="silu",
                      out_dtype=jnp.bfloat16).reshape(B, L, 4 * H)
        h = res_linear(h1, w_m2, b_m2, h, mod2)

    return h


if __name__ == "__main__":
    # small shapes; hd = HIDDEN // HEADS = 128 (lane-aligned, as in production)
    B, L, TEXT_DIM, HIDDEN, HEADS, NUM_BLOCKS = 2, 16, 32, 256, 2, 2

    key = jax.random.PRNGKey(0)
    k_x, k_t, k_p = jax.random.split(key, 3)

    x = jax.random.normal(k_x, (B, L, TEXT_DIM), jnp.float32)
    timesteps = jax.random.uniform(k_t, (B,), jnp.float32, 0.0, 1000.0)
    # additive float mask: 0.0 = attend, -1e9 = masked (last token masked)
    mask = jnp.zeros((B, L), jnp.float32).at[:, -1].set(-1e9)

    params = init_params(k_p, TEXT_DIM, HIDDEN, NUM_BLOCKS)

    out = token_refiner(x, timesteps, mask, params, HEADS)
    out = jax.block_until_ready(out)

    assert out.shape == (B, L, HIDDEN), out.shape
    assert bool(jnp.all(jnp.isfinite(out)))
    print("KERNEL_OK")
</pallas_src>

<mosaic_0001>
module attributes {stable_mosaic.version = 11 : i64} {
  func.func @_linear2d_kernel(%arg0: i32, %arg1: i32, %arg2: memref<2x256xf32, #tpu.memory_space<vmem>>, %arg3: memref<256x256xbf16, #tpu.memory_space<vmem>>, %arg4: memref<1x256xf32, #tpu.memory_space<vmem>>, %arg5: memref<2x256xf32, #tpu.memory_space<vmem>>, %arg6: memref<2x256xbf16, #tpu.memory_space<vmem>>) attributes {dimension_semantics = [#tpu.dimension_semantics<parallel>, #tpu.dimension_semantics<arbitrary>], iteration_bounds = array<i64: 1, 1>, scalar_prefetch = 0 : i64, scratch_operands = 1 : i64, tpu.core_type = #tpu.core_type<tc>, window_params = [{transform_indices = @transform_0, window_bounds = array<i64: 2, 256>}, {transform_indices = @transform_1, window_bounds = array<i64: 256, 256>}, {transform_indices = @transform_2, window_bounds = array<i64: 1, 256>}, {transform_indices = @transform_3, window_bounds = array<i64: 2, 256>}]} {
    %c0_i32 = arith.constant 0 : i32
    %0 = arith.cmpi eq, %arg1, %c0_i32 : i32
    %1 = arith.extui %0 : i1 to i32
    %c0_i32_0 = arith.constant 0 : i32
    %2 = arith.cmpi ne, %1, %c0_i32_0 : i32
    scf.if %2 {
      %c0_9 = arith.constant 0 : index
      %c0_10 = arith.constant 0 : index
      %16 = vector.load %arg2[%c0_9, %c0_10] : memref<2x256xf32, #tpu.memory_space<vmem>>, vector<2x256xf32>
      %17 = arith.truncf %16 : vector<2x256xf32> to vector<2x256xbf16>
      %c0_11 = arith.constant 0 : index
      %c0_12 = arith.constant 0 : index
      %18 = vector.load %arg6[%c0_11, %c0_12] : memref<2x256xbf16, #tpu.memory_space<vmem>>, vector<2x256xbf16>
      tpu.vector_store %arg6[%c0_11, %c0_12], %17 {strides = array<i32>} : memref<2x256xbf16, #tpu.memory_space<vmem>>, vector<2x256xbf16>,
    } else {
    }
    %c0 = arith.constant 0 : index
    %c0_1 = arith.constant 0 : index
    %3 = vector.load %arg6[%c0, %c0_1] : memref<2x256xbf16, #tpu.memory_space<vmem>>, vector<2x256xbf16>
    %c0_2 = arith.constant 0 : index
    %c0_3 = arith.constant 0 : index
    %4 = vector.load %arg3[%c0_2, %c0_3] : memref<256x256xbf16, #tpu.memory_space<vmem>>, vector<256x256xbf16>
    %cst = arith.constant dense<0.000000e+00> : vector<2x256xf32>
    %5 = tpu.matmul %3, %4, %cst {dimension_numbers = #tpu.dot_dimension_numbers<[1], [0], [0], [1], [0, 0, 1, 1], [], []>} : vector<2x256xbf16>, vector<256x256xbf16>, vector<2x256xf32> -> vector<2x256xf32>
    %c0_4 = arith.constant 0 : index
    %c0_5 = arith.constant 0 : index
    %6 = vector.load %arg4[%c0_4, %c0_5] : memref<1x256xf32, #tpu.memory_space<vmem>>, vector<1x256xf32>
    %7 = vector.broadcast %6 : vector<1x256xf32> to vector<2x256xf32>
    %8 = arith.addf %5, %7 : vector<2x256xf32>
    %9 = arith.negf %8 : vector<2x256xf32>
    %10 = math.exp %9 : vector<2x256xf32>
    %cst_6 = arith.constant 1.000000e+00 : f32
    %11 = vector.broadcast %cst_6 : f32 to vector<2x256xf32>
    %12 = arith.addf %11, %10 : vector<2x256xf32>
    %13 = arith.divf %11, %12 : vector<2x256xf32>
    %14 = arith.mulf %8, %13 : vector<2x256xf32>
    %c0_7 = arith.constant 0 : index
    %c0_8 = arith.constant 0 : index
    %15 = vector.load %arg5[%c0_7, %c0_8] : memref<2x256xf32, #tpu.memory_space<vmem>>, vector<2x256xf32>
    tpu.vector_store %arg5[%c0_7, %c0_8], %14 {strides = array<i32>} : memref<2x256xf32, #tpu.memory_space<vmem>>, vector<2x256xf32>,
    return
  }
  func.func @transform_0(%arg0: i32, %arg1: i32) -> (i32, i32) {
    %c0_i32 = arith.constant 0 : i32
    %c0_i32_0 = arith.constant 0 : i32
    return %arg0, %c0_i32 : i32, i32
  }
  func.func @transform_1(%arg0: i32, %arg1: i32) -> (i32, i32) {
    %c0_i32 = arith.constant 0 : i32
    %c0_i32_0 = arith.constant 0 : i32
    return %c0_i32, %arg1 : i32, i32
  }
  func.func @transform_2(%arg0: i32, %arg1: i32) -> (i32, i32) {
    %c0_i32 = arith.constant 0 : i32
    %c0_i32_0 = arith.constant 0 : i32
    return %c0_i32, %arg1 : i32, i32
  }
  func.func @transform_3(%arg0: i32, %arg1: i32) -> (i32, i32) {
    %c0_i32 = arith.constant 0 : i32
    return %arg0, %arg1 : i32, i32
  }
}

</mosaic_0001>

<bundles_post_ra>
// kernel: tpu_custom_call.1
= control target key start
LH: loop header
LB: loop body
LE: loop exit
PB: predicated region body
PF: predicated region fallthrough
CT: control target
= control target key end

     0   :  { %8 = vsyncpa [#allocation4], 0  ;;  %s636_s0 = inlined_call_operand.hbm [shape: f32[2,256], index: 0, kind: input, shape index: {}]   ;;  %s637_s1 = inlined_call_operand.hbm [shape: bf16[256,256], index: 1, kind: input, shape index: {}]   ;;  %s638_s2 = inlined_call_operand.vmem [shape: f32[1,256], index: 2, kind: input, shape index: {}]   ;;  %s639_s3 = inlined_call_operand.hbm [shape: f32[2,256], index: 3, kind: output, shape index: {}]  }
   0x1   :  { %9 = vsyncpa [#allocation7], 0 }
   0x2   :  { %10 = vsyncpa [#allocation5], 0  ;;  %s564_s12 = smov [#allocation3]   ;;  %s565_s14 = smov [#allocation6]  }
   0x3   :  { %s17_s13 = sshll.u32 %s564_s12, 4  ;;  %s26_s15 = sshll.u32 %s565_s14, 4  ;;  %s18_s13 = int_to_ptr.vmem [resolvable:$true] %s17_s13  ;;  %s590_s15 = int_to_ptr.vmem [resolvable:$true] %s26_s15 }
   0x4   :  { %s492_s18 = scalar_lea.hbm %s636_s0, 64 }
   0x5   :  { %p493_p0 = scmp.ne.s32.totalorder %s636_s0, %s492_s18  ;;  %p496_p1 = scmp.lt.u32.totalorder %s492_s18, %s636_s0 }
   0x7   :  { %p498_p2 = pnand %p496_p1, %p493_p0 }
   0x9   :  { %501 = shalt.err (!%p498_p2)
}
   0xa   :  { %s502_s23 = scalar_lea.vmem %s18_s13, 64  ;;  %p507_p4 = scmp.lt.s32.totalorder %s18_s13, %s18_s13 }
   0xb   :  { %p503_p3 = scmp.ne.s32.totalorder %s18_s13, %s502_s23  ;;  %p508_p5 = scmp.lt.s32.totalorder %s502_s23, %s502_s23 }
   0xd   :  { %p509_p6 = por %p508_p5, %p507_p4 }
   0xf   :  { %p510_p7 = pnand %p509_p6, %p503_p3 }
  0x11   :  { %513 = shalt.err (!%p510_p7)
}
  0x12   :  { %20 = dma.hbm_to_vmem [thread:$0]  %s636_s0, 64, %s18_s13, [#allocation4]  }
  0x13   :  { %s514_s28 = scalar_lea.hbm %s637_s1, 4096 }
  0x14   :  { %p515_p8 = scmp.ne.s32.totalorder %s637_s1, %s514_s28  ;;  %p518_p9 = scmp.lt.u32.totalorder %s514_s28, %s637_s1 }
  0x16   :  { %p520_p10 = pnand %p518_p9, %p515_p8 }
  0x18   :  { %523 = shalt.err (!%p520_p10)
}
  0x19   :  { %s524_s6 = scalar_lea.vmem %s590_s15, 4096  ;;  %p529_p12 = scmp.lt.s32.totalorder %s590_s15, %s590_s15 }
  0x1a   :  { %p525_p11 = scmp.ne.s32.totalorder %s590_s15, %s524_s6  ;;  %p530_p13 = scmp.lt.s32.totalorder %s524_s6, %s524_s6 }
  0x1c   :  { %p531_p0 = por %p530_p13, %p529_p12 }
  0x1e   :  { %p532_p1 = pnand %p531_p0, %p525_p11 }
  0x20   :  { %535 = shalt.err (!%p532_p1)
}
  0x21   :  { %s566_s0 = smov 128   ;;  %s567_s7 = smov 8  }
  0x22   :  { %32 = dma.hbm_to_vmem [thread:$0]  %s637_s1, 4096, %s590_s15, [#allocation7], %s566_s0, %s566_s0, %s567_s7  }
  0x23   :  { %558 = dma.done.wait [#allocation4], 64  }
  0x24   :  { %559 = vsyncadd [#allocation4], 4294967232 }
  0x25   :  { %560 = dma.done.wait [#allocation7], 4096  }
  0x26   :  { %561 = vsyncadd [#allocation7], 4294963200  ;;  %v436_v0 = vld [vmem:[#allocation6 + $0x4] ss:$8 sps:$4 sm:$0xff]   ;;  %v438_v1 = vld [vmem:[#allocation6] ss:$8 sps:$4 sm:$0xff]   ;;  %v65_v11 = vlaneseq }
  0x27   :  { %308 = vmatprep.subr.bf16.mxu0 %v436_v0  ;;  %v439_v2 = vld [vmem:[#allocation6 + $0x14] ss:$8 sps:$4 sm:$0xff]   ;;  %v441_v3 = vld [vmem:[#allocation6 + $0x10] ss:$8 sps:$4 sm:$0xff]   ;;  %v442_v4 = vld [vmem:[#allocation6 + $0x24] ss:$8 sps:$4 sm:$0xff]  }
  0x28   :  { %309 = vmatpush1.bf16.msra.mxu0 %v438_v1  ;;  %v444_v5 = vld [vmem:[#allocation6 + $0x20] ss:$8 sps:$4 sm:$0xff]   ;;  %v445_v6 = vld [vmem:[#allocation6 + $0x34] ss:$8 sps:$4 sm:$0xff]   ;;  %v447_v7 = vld [vmem:[#allocation6 + $0x30] ss:$8 sps:$4 sm:$0xff]  }
  0x29   :  { %310 = vmatprep.subr.bf16.mxu0 %v439_v2  ;;  %v448_v8 = vld [vmem:[#allocation6 + $0x44] ss:$8 sps:$4 sm:$0xff]   ;;  %v568_v9 = vmov 1966171168   ;;  %v450_v12 = vld [vmem:[#allocation6 + $0x40] ss:$8 sps:$4 sm:$0xff]  }
  0x2a   :  { %v63_v10 = vunpack.c.l.s4 %v568_v9  ;;  %v451_v13 = vld [vmem:[#allocation6 + $0x54] ss:$8 sps:$4 sm:$0xff]   ;;  %v66_v15 = vshrl.u32 %v65_v11, 7  ;;  %v453_v16 = vld [vmem:[#allocation6 + $0x50] ss:$8 sps:$4 sm:$0xff]  }
  0x2b   :  { %v454_v17 = vld [vmem:[#allocation6 + $0x64] ss:$8 sps:$4 sm:$0xff]   ;;  %v391_v18 = vld.sshfl [vmem:[#allocation3] sm:$0x33 pattern:$0x76325410] }
  0x2c   :  { %311 = vmatpush1.bf16.msra.mxu0 %v441_v3  ;;  %v64_v14 = vunpack.c.0.s8 %v63_v10  ;;  %v54_v19 = vcombine.high %v391_v18, %v391_v18  ;;  %v456_v21 = vld [vmem:[#allocation6 + $0x60] ss:$8 sps:$4 sm:$0xff]   ;;  %v457_v22 = vld [vmem:[#allocation6 + $0x74] ss:$8 sps:$4 sm:$0xff]   ;;  %v459_v25 = vld [vmem:[#allocation6 + $0x70] ss:$8 sps:$4 sm:$0xff]  }
  0x2d   :  { %312 = vmatprep.subr.bf16.mxu0 %v442_v4  ;;  %v460_v26 = vld [vmem:[#allocation6 + $0x84] ss:$8 sps:$4 sm:$0xff]   ;;  %v462_v27 = vld [vmem:[#allocation6 + $0x80] ss:$8 sps:$4 sm:$0xff]   ;;  %v463_v28 = vld [vmem:[#allocation6 + $0x94] ss:$8 sps:$4 sm:$0xff]  }
  0x2e   :  { %v67_v20 = vsub.s32 %v64_v14, %v66_v15  ;;  %v392_v23 = vpack.c.bf16 %v54_v19, %v391_v18  ;;  %v465_v29 = vld [vmem:[#allocation6 + $0x90] ss:$8 sps:$4 sm:$0xff]   ;;  %v466_v31 = vld [vmem:[#allocation6 + $0xa4] ss:$8 sps:$4 sm:$0xff]   ;;  %v468_v34 = vld [vmem:[#allocation6 + $0xa0] ss:$8 sps:$4 sm:$0xff]  }
  0x2f   :  { %v469_v35 = vld [vmem:[#allocation6 + $0xb4] ss:$8 sps:$4 sm:$0xff]   ;;  %v471_v36 = vld [vmem:[#allocation6 + $0xb0] ss:$8 sps:$4 sm:$0xff]   ;;  %v472_v37 = vld [vmem:[#allocation6 + $0xc4] ss:$8 sps:$4 sm:$0xff]  }
  0x30   :  { %313 = vmatpush1.bf16.msra.mxu0 %v444_v5  ;;  %v68_v24 = vrot.slane %v392_v23, %v67_v20  ;;  %v474_v38 = vld [vmem:[#allocation6 + $0xc0] ss:$8 sps:$4 sm:$0xff]   ;;  %v475_v39 = vld [vmem:[#allocation6 + $0xd4] ss:$8 sps:$4 sm:$0xff]   ;;  %v477_v40 = vld [vmem:[#allocation6 + $0xd0] ss:$8 sps:$4 sm:$0xff]  }
  0x31   :  { %314 = vmatprep.subr.bf16.mxu0 %v445_v6  ;;  %v478_v41 = vld [vmem:[#allocation6 + $0xe4] ss:$8 sps:$4 sm:$0xff]   ;;  %v480_v42 = vld [vmem:[#allocation6 + $0xe0] ss:$8 sps:$4 sm:$0xff]   ;;  %v481_v43 = vld [vmem:[#allocation6 + $0xf4] ss:$8 sps:$4 sm:$0xff]  }
  0x32   :  { %393 = vst.sshfl [vmem:[#allocation2] sm:$0x5 pattern:$0x73625140] %v68_v24  ;;  %v483_v44 = vld [vmem:[#allocation6 + $0xf0] ss:$8 sps:$4 sm:$0xff]  }
  0x33   :  { %v115_v46 = vsub.s32 0, %v66_v15  ;;  %v111_v47 = vld [vmem:[%s638_s2] sm:$0x3]  ;;  %v119_v48 = vsub.s32 1, %v66_v15  ;;  %s569_s2 = smov [#allocation8]  }
  0x34   :  { %315 = vmatpush1.bf16.msra.mxu0 %v447_v7  ;;  %s381_s11 = sshll.u32 %s569_s2, 4  ;;  %s382_s11 = int_to_ptr.vmem [resolvable:$true] %s381_s11 }
  0x35   :  { %316 = vmatprep.subr.bf16.mxu0 %v448_v8  ;;  %v116_v49 = vrot.slane %v111_v47, %v115_v46  ;;  %v120_v50 = vrot.slane %v111_v47, %v119_v48  ;;  %s536_s12 = scalar_lea.vmem %s382_s11, 64  ;;  %p541_p3 = scmp.lt.s32.totalorder %s382_s11, %s382_s11 }
  0x36   :  { %p537_p2 = scmp.ne.s32.totalorder %s382_s11, %s536_s12  ;;  %p542_p4 = scmp.lt.s32.totalorder %s536_s12, %s536_s12 }
  0x38   :  { %317 = vmatpush1.bf16.msra.mxu0 %v450_v12  ;;  %p543_p5 = por %p542_p4, %p541_p3 }
  0x39   :  { %318 = vmatprep.subr.bf16.mxu0 %v451_v13  ;;  %v394_v30 = vld.sshfl [vmem:[#allocation2] sm:$0x11 pattern:$0x75316420] }
  0x3a   :  { %v131_v32 = vcombine.high %v394_v30, %v394_v30  ;;  %v138_v45 = vrot.slane %v394_v30, %v67_v20  ;;  %p544_p6 = pnand %p543_p5, %p537_p2 }
  0x3c   :  { %319 = vmatpush1.bf16.msra.mxu0 %v453_v16  ;;  %v145_v33 = vrot.slane %v131_v32, %v67_v20 }
  0x3d   :  { %320 = vmatprep.subr.bf16.mxu0 %v454_v17 }
  0x3e   :  { %340 = vmatprep.mubr.bf16.mxu0 %v145_v33 }
  0x40   :  { %321 = vmatpush1.bf16.msra.mxu0 %v456_v21 }
  0x41   :  { %322 = vmatprep.subr.bf16.mxu0 %v457_v22 }
  0x44   :  { %323 = vmatpush1.bf16.msra.mxu0 %v459_v25 }
  0x45   :  { %324 = vmatprep.subr.bf16.mxu0 %v460_v26 }
  0x48   :  { %325 = vmatpush1.bf16.msra.mxu0 %v462_v27 }
  0x49   :  { %326 = vmatprep.subr.bf16.mxu0 %v463_v28 }
  0x4c   :  { %327 = vmatpush1.bf16.msra.mxu0 %v465_v29 }
  0x4d   :  { %328 = vmatprep.subr.bf16.mxu0 %v466_v31 }
  0x50   :  { %329 = vmatpush1.bf16.msra.mxu0 %v468_v34 }
  0x51   :  { %330 = vmatprep.subr.bf16.mxu0 %v469_v35 }
  0x54   :  { %331 = vmatpush1.bf16.msra.mxu0 %v471_v36 }
  0x55   :  { %332 = vmatprep.subr.bf16.mxu0 %v472_v37 }
  0x58   :  { %333 = vmatpush1.bf16.msra.mxu0 %v474_v38 }
  0x59   :  { %334 = vmatprep.subr.bf16.mxu0 %v475_v39 }
  0x5c   :  { %335 = vmatpush1.bf16.msra.mxu0 %v477_v40 }
  0x5d   :  { %336 = vmatprep.subr.bf16.mxu0 %v478_v41 }
  0x60   :  { %337 = vmatpush1.bf16.msra.mxu0 %v480_v42 }
  0x61   :  { %338 = vmatprep.subr.bf16.mxu0 %v481_v43 }
  0x64   :  { %339 = vmatpush1.bf16.msra.mxu0 %v483_v44 }
  0x67   :  { %341 = vmatmul.mubr.bf16.vlgmr.msra.gmra.mrb[0].mxu0 %v138_v45 }
 0x13a   :  { %v342_v51 = vpop.f32.mrb[0].mxu0 }
 0x13b   :  { %v343_v52 = vadd.f32 %v342_v51, %v116_v49  ;;  %v344_v53 = vpop.f32.mrb[1].mxu0 }
 0x13c   :  { %v345_v54 = vadd.f32 %v344_v53, %v120_v50  ;;  %v346_v55 = vpop.f32.mrb[2].mxu0 }
 0x13d   :  { %v427_v56 = vmul.f32 -1.442695, %v343_v52  ;;  %v347_v57 = vpop.f32.mrb[3].mxu0 }
 0x13e   :  { %v428_v58 = vmul.f32 -1.442695, %v345_v54 }
 0x13f   :  { %484 = vpow2.f32 %v427_v56 }
 0x140   :  { %486 = vpow2.f32 %v428_v58 }
 0x149   :  { %v485_v59 = vpop.eup %484 }
 0x14a   :  { %v487_v60 = vpop.eup %486  ;;  %v355_v61 = vadd.f32 1.0, %v485_v59 }
 0x14b   :  { %v356_v62 = vadd.f32 1.0, %v487_v60 }
 0x14c   :  { %488 = vrcp.f32 %v355_v61 }
 0x14d   :  { %490 = vrcp.f32 %v356_v62 }
 0x156   :  { %v489_v63 = vpop.eup %488 }
 0x157   :  { %v491_v0 = vpop.eup %490  ;;  %v361_v1 = vmul.f32 %v489_v63, %v343_v52 }
 0x158   :  { %v362_v2 = vmul.f32 %v491_v0, %v345_v54 }
 0x15a   :  { %v365_v3 = vcombine.low %v361_v1, %v362_v2 }
 0x15c   :  { %429 = vst.sshfl [vmem:[#allocation8] sm:$0x33 pattern:$0x76325410] %v365_v3 }
 0x15d   :  { %547 = shalt.err (!%p544_p6)
}
 0x15e   :  { %s548_s15 = scalar_lea.hbm %s639_s3, 64 }
 0x15f   :  { %p549_p7 = scmp.ne.s32.totalorder %s639_s3, %s548_s15  ;;  %p552_p8 = scmp.lt.u32.totalorder %s548_s15, %s639_s3 }
 0x161   :  { %p554_p9 = pnand %p552_p8, %p549_p7 }
 0x163   :  { %557 = shalt.err (!%p554_p9)
}
 0x164   :  { %384 = dma.vmem_to_hbm [thread:$0]  %s382_s11, 64, %s639_s3, [#allocation5]  }
 0x165   :  { %562 = dma.done.wait [#allocation5], 64  }
 0x166   :  { %563 = vsyncadd [#allocation5], 4294967232 }
 0x167   :  { %388 = vsyncpa [#allocation4], 1 }
 0x168   :  { %389 = vsyncpa [#allocation7], 1 }
 0x169   :  { %390 = vsyncpa [#allocation5], 1 }

</bundles_post_ra>
